<compile_context>
chip_gen: v7x
topology: tpu7x:2x2x1
jax: 0.10.0
libtpu: 0.0.40
codegen_flags: <defaults>
</compile_context>

<pallas_src>
import jax
import jax.numpy as jnp
from jax.experimental import pallas as pl
from jax.experimental.pallas import tpu as pltpu

_LANE = 128


def _awl_kernel(lp_ref, out_ref):
    # lp_ref: (2, LANES) f32 in VMEM -- row 0 = losses, row 1 = params (zero-padded).
    # out_ref: (1,) f32 in SMEM.
    lp = lp_ref[...]
    losses = lp[0:1, :]          # (1, LANES)
    params = lp[1:2, :]          # (1, LANES)
    # VPU mul/add + EUP exp; padded lanes are exactly zero.
    weighted = 0.5 * jnp.exp(-params) * losses + params
    out_ref[0] = jnp.sum(weighted)


def _awl_forward(losses, params):
    """losses: (N,) per-task losses; params: (N,) learned log-variances. Returns scalar."""
    num = losses.shape[0]
    lanes = max(_LANE, pl.cdiv(num, _LANE) * _LANE)

    # Single stacked, lane-padded input tile -> one DMA, dense lanes.
    lp = jnp.zeros((2, lanes), dtype=jnp.float32)
    lp = lp.at[0, :num].set(losses.astype(jnp.float32))
    lp = lp.at[1, :num].set(params.astype(jnp.float32))

    out = pl.pallas_call(
        _awl_kernel,
        out_shape=jax.ShapeDtypeStruct((1,), jnp.float32),
        in_specs=[pl.BlockSpec((2, lanes), lambda: (0, 0))],
        out_specs=pl.BlockSpec(memory_space=pltpu.MemorySpace.SMEM),
    )(lp)
    return out.reshape(())


@jax.custom_vjp
def automatic_weighted_loss(losses, params):
    return _awl_forward(losses, params)


def _awl_fwd(losses, params):
    l32 = losses.astype(jnp.float32)
    p32 = params.astype(jnp.float32)
    return _awl_forward(l32, p32), (l32, p32)


def _awl_bwd(res, g):
    losses, params = res
    w = 0.5 * jnp.exp(-params)
    # d/dloss_i  = 0.5*exp(-s_i)
    # d/dparam_i = -0.5*exp(-s_i)*loss_i + 1
    return (g * w, g * (1.0 - w * losses))


automatic_weighted_loss.defvjp(_awl_fwd, _awl_bwd)


if __name__ == "__main__":
    num = 2

    # Deterministic parameter init, matching torch.ones(num) in __init__.
    params = jnp.ones((num,), dtype=jnp.float32)

    # Small deterministic example "multi-task losses" (scalars), positive-valued.
    key = jax.random.PRNGKey(0)
    losses = jax.random.uniform(key, (num,), dtype=jnp.float32, minval=0.5, maxval=2.0)

    out = automatic_weighted_loss(losses, params)
    out = jax.block_until_ready(out)

    # Pure-JAX reference check (forward).
    ref = jnp.sum(0.5 * jnp.exp(-params) * losses + params)
    assert jnp.allclose(out, ref, rtol=1e-6, atol=1e-6), (out, ref)

    print("KERNEL_OK")
</pallas_src>

<mosaic_0001>
module attributes {stable_mosaic.version = 11 : i64} {
  func.func @_awl_kernel(%arg0: memref<2x128xf32, #tpu.memory_space<vmem>>, %arg1: memref<1xf32, #tpu.memory_space<smem>>) attributes {dimension_semantics = [], scalar_prefetch = 0 : i64, scratch_operands = 0 : i64, tpu.core_type = #tpu.core_type<tc>} {
    %c0 = arith.constant 0 : index
    %c0_0 = arith.constant 0 : index
    %0 = vector.load %arg0[%c0, %c0_0] : memref<2x128xf32, #tpu.memory_space<vmem>>, vector<2x128xf32>
    %1 = vector.extract_strided_slice %0 {offsets = [0, 0], sizes = [1, 128], strides = [1, 1]} : vector<2x128xf32> to vector<1x128xf32>
    %2 = vector.extract_strided_slice %0 {offsets = [1, 0], sizes = [1, 128], strides = [1, 1]} : vector<2x128xf32> to vector<1x128xf32>
    %cst = arith.constant 0.000000e+00 : f32
    %3 = vector.broadcast %cst : f32 to vector<1x128xf32>
    %4 = arith.subf %3, %2 : vector<1x128xf32>
    %5 = math.exp %4 : vector<1x128xf32>
    %cst_1 = arith.constant 5.000000e-01 : f32
    %6 = vector.broadcast %cst_1 : f32 to vector<1x128xf32>
    %7 = arith.mulf %6, %5 : vector<1x128xf32>
    %8 = arith.mulf %7, %1 : vector<1x128xf32>
    %9 = arith.addf %8, %2 : vector<1x128xf32>
    %10 = vector.shape_cast %9 : vector<1x128xf32> to vector<1x1x128xf32>
    %cst_2 = arith.constant dense<0.000000e+00> : vector<1xf32>
    %11 = vector.multi_reduction <add>, %10, %cst_2 [1, 2] : vector<1x1x128xf32> to vector<1xf32>
    %12 = vector.shape_cast %11 : vector<1xf32> to vector<1x1x1xf32>
    %13 = vector.extract %12[0, 0, 0] : f32 from vector<1x1x1xf32>
    %c0_3 = arith.constant 0 : index
    %14 = memref.load %arg1[%c0_3] : memref<1xf32, #tpu.memory_space<smem>>
    memref.store %13, %arg1[%c0_3] : memref<1xf32, #tpu.memory_space<smem>>
    return
  }
}

</mosaic_0001>

<bundles_post_ra>
// kernel: tpu_custom_call.1
= control target key start
LH: loop header
LB: loop body
LE: loop exit
PB: predicated region body
PF: predicated region fallthrough
CT: control target
= control target key end

     0   :  { %6 = vsyncpa [#allocation3], 0  ;;  %s139_s0 = inlined_call_operand.hbm [shape: f32[2,128], index: 0, kind: input, shape index: {}]   ;;  %s140_s1 = inlined_call_operand.hbm [shape: f32[1], index: 1, kind: output, shape index: {}]  }
   0x1   :  { %7 = vsyncpa [#allocation4], 0  ;;  %s103_s6 = smov [#allocation2]   ;;  %s67_s10 = scalar_lea.hbm %s139_s0, 32 }
   0x2   :  { %s14_s7 = sshll.u32 %s103_s6, 4  ;;  %p68_p0 = scmp.ne.s32.totalorder %s139_s0, %s67_s10  ;;  %s15_s7 = int_to_ptr.vmem [resolvable:$true] %s14_s7 }
   0x3   :  { %p71_p1 = scmp.lt.u32.totalorder %s67_s10, %s139_s0 }
   0x5   :  { %p73_p2 = pnand %p71_p1, %p68_p0 }
   0x7   :  { %76 = shalt.err (!%p73_p2)
}
   0x8   :  { %s77_s15 = scalar_lea.vmem %s15_s7, 32  ;;  %p82_p4 = scmp.lt.s32.totalorder %s15_s7, %s15_s7 }
   0x9   :  { %p78_p3 = scmp.ne.s32.totalorder %s15_s7, %s77_s15  ;;  %p83_p5 = scmp.lt.s32.totalorder %s77_s15, %s77_s15 }
   0xb   :  { %p84_p6 = por %p83_p5, %p82_p4 }
   0xd   :  { %p85_p7 = pnand %p84_p6, %p78_p3 }
   0xf   :  { %88 = shalt.err (!%p85_p7)
}
  0x10   :  { %17 = dma.hbm_to_vmem [thread:$0]  %s139_s0, 32, %s15_s7, [#allocation3]  }
  0x11   :  { %99 = dma.done.wait [#allocation3], 32  }
  0x12   :  { %100 = vsyncadd [#allocation3], 4294967264  ;;  %v21_v0 = vld [vmem:[#allocation2] sm:$0x3]  ;;  %vm34_vm0 = vcmask 1040384   ;;  %s89_s20 = scalar_lea.hbm %s140_s1, 16 }
  0x13   :  { %v22_v1 = vsub.f32 0.0, %v21_v0  ;;  %v27_v3 = vrot.slane %v21_v0, 7  ;;  %p90_p8 = scmp.ne.s32.totalorder %s140_s1, %s89_s20  ;;  %p93_p9 = scmp.lt.u32.totalorder %s89_s20, %s140_s1 }
  0x15   :  { %v23_v2 = vmul.f32 1.442695, %v22_v1  ;;  %p95_p10 = pnand %p93_p9, %p90_p8 }
  0x17   :  { %65 = vpow2.f32 %v23_v2 }
  0x21   :  { %v66_v4 = vpop.eup %65 }
  0x22   :  { %v25_v5 = vmul.f32 0.5, %v66_v4 }
  0x24   :  { %v29_v6 = vmul.f32 %v27_v3, %v25_v5 }
  0x26   :  { %v30_v7 = vadd.f32 %v29_v6, %v21_v0 }
  0x28   :  { %v32_v8 = vrot.slane %v30_v7, 1 }
  0x2a   :  { %v35_v9 = vsel %vm34_vm0, %v32_v8, 0.0 }
  0x2b   :  { %36 = vadd.xlane.f32.xlu0 %v35_v9 }
  0xb8   :  { %v37_v10 = vpop.xlane.xlu0 %36 }
  0xb9   :  { %v38_v11 = vrot.slane %v37_v10, 4 }
  0xbb   :  { %v39_v12 = vadd.f32 %v38_v11, %v37_v10 }
  0xbd   :  { %v40_v13 = vrot.slane %v39_v12, 2 }
  0xbf   :  { %v41_v14 = vadd.f32 %v40_v13, %v39_v12 }
  0xc1   :  { %v42_v15 = vrot.slane %v41_v14, 1 }
  0xc3   :  { %v43_v16 = vadd.f32 %v42_v15, %v41_v14 }
  0xc5   :  { %61 = vpush %v43_v16 }
  0xf6   :  { %s62_s0 = spop %61 }
  0xf7   :  { %46 = sst [smem:[#allocation5]] %s62_s0 }
  0xf8   :  { %98 = shalt.err (!%p95_p10)
}
  0xf9   :  { %s104_s25 = smov [#allocation5]  }
  0xfa   :  { %54 = dma.smem_to_hbm %s104_s25, 16, %s140_s1, [#allocation4]  }
  0xfb   :  { %101 = dma.done.wait [#allocation4], 16  }
  0xfc   :  { %102 = vsyncadd [#allocation4], 4294967280 }
  0xfd   :  { %58 = sfence }
  0xfe   :  { %59 = vsyncpa [#allocation3], 1 }
  0xff   :  { %60 = vsyncpa [#allocation4], 1 }

</bundles_post_ra>
